<compile_context>
chip_gen: v6e
topology: v6e:2x2x1
jax: 0.10.0
libtpu: 0.0.40
codegen_flags: <defaults>
</compile_context>

<pallas_src>
import functools
import math

import jax
import jax.numpy as jnp
from jax.experimental import pallas as pl
from jax.experimental.pallas import tpu as pltpu


_SQRT_2_OVER_PI = math.sqrt(2.0 / math.pi)


def _gelu_new(x):
    # transformers' gelu_new: 0.5*x*(1+tanh(sqrt(2/pi)*(x+0.044715*x^3)))
    return 0.5 * x * (1.0 + jnp.tanh(_SQRT_2_OVER_PI * (x + 0.044715 * x * x * x)))


# --------------------------------------------------------------------------
# Kernel
# --------------------------------------------------------------------------
def _ffn_kernel(x_ref, w1_ref, b1_ref, w2_ref, b2_ref, gamma_ref, beta_ref,
                out_ref, *, eps, chunk, n_chunks):
    compute_dtype = w1_ref.dtype
    # Force full precision only on the explicit f32 MXU path; bf16 stays on the
    # fast MXU path.
    prec = (jax.lax.Precision.HIGHEST
            if compute_dtype == jnp.float32 else None)

    # MXU operand for layer_1: cast once, hoisted out of the chunk loop.
    x_mxu = x_ref[...].astype(compute_dtype)

    # Chunk d_inner: y = sum_k gelu(x @ W1[:,k] + b1[k]) @ W2[k,:], f32 accum.
    # chunk is a multiple of 256 when n_chunks > 1, so lane/sublane slices stay
    # aligned; the static Python loop is fully visible to the scheduler.
    y = None
    for k in range(n_chunks):
        k0 = k * chunk
        w1c = w1_ref[:, pl.ds(k0, chunk)]
        hc = jnp.dot(x_mxu, w1c, preferred_element_type=jnp.float32,
                     precision=prec)
        hc = hc + b1_ref[:, pl.ds(k0, chunk)].astype(jnp.float32)
        hc = _gelu_new(hc)                       # VPU + EUP (tanh), f32
        # dropout: identity in eval mode.
        # TODO(synk): train-mode dropout (config.dropout) not implemented.
        w2c = w2_ref[pl.ds(k0, chunk), :]
        yk = jnp.dot(hc.astype(compute_dtype), w2c,
                     preferred_element_type=jnp.float32, precision=prec)
        y = yk if y is None else y + yk

    y = y + b2_ref[...].astype(jnp.float32)

    # Residual + LayerNorm over last dim, one-pass statistics.
    # NOTE: on a partial last row tile the padded rows carry garbage; they are
    # masked on writeback and there is no cross-row reduction here.
    z = y + x_ref[...].astype(jnp.float32)
    mean = jnp.mean(z, axis=-1, keepdims=True)
    mean_sq = jnp.mean(z * z, axis=-1, keepdims=True)
    var = jnp.maximum(mean_sq - mean * mean, 0.0)
    inv = jax.lax.rsqrt(var + eps)
    out = (z - mean) * inv * gamma_ref[...].astype(jnp.float32) \
        + beta_ref[...].astype(jnp.float32)

    out_ref[...] = out.astype(out_ref.dtype)


# --------------------------------------------------------------------------
# Cached hardware / feature probes (module-level, run at most once)
# --------------------------------------------------------------------------
@functools.lru_cache(maxsize=1)
def _device_kind():
    try:
        return jax.devices()[0].device_kind.lower()
    except Exception:
        return ""


@functools.lru_cache(maxsize=1)
def _vmem_limit_bytes():
    # Physical VMEM minus headroom for Mosaic internal scratch. Never the full
    # physical capacity (which is only 64 MiB/TC on v7x).
    headroom = 16 * 1024 * 1024
    cap = 64 * 1024 * 1024
    try:
        cap = int(pltpu.get_tpu_info().vmem_capacity_bytes)
    except Exception:
        pass
    return max(32 * 1024 * 1024, cap - headroom)


@functools.lru_cache(maxsize=1)
def _supports_buffered_one():
    """One-time probe: can this build single-buffer a resident input block?"""
    if not hasattr(pl, "Buffered"):
        return False
    try:
        def _probe_kernel(x_ref, o_ref):
            o_ref[...] = x_ref[...]

        fn = pl.pallas_call(
            _probe_kernel,
            out_shape=jax.ShapeDtypeStruct((16, 128), jnp.float32),
            grid=(2,),
            in_specs=[pl.BlockSpec((8, 128), lambda i: (0, 0),
                                   pipeline_mode=pl.Buffered(1))],
            out_specs=pl.BlockSpec((8, 128), lambda i: (i, 0)),
        )
        jax.jit(fn).lower(jnp.zeros((8, 128), jnp.float32)).compile()
        return True
    except Exception:
        return False


def _default_block_rows(d_inner, compute_itemsize):
    kind = _device_kind()
    if "v7" in kind:
        return 256          # 64 MiB VMEM per TC
    if compute_itemsize <= 2 and d_inner <= 3072:
        return 1024         # v5e/v6e: 128 MiB VMEM, amortize per-step overhead
    return 512


def _pick_chunk(d_inner):
    # Prefer ~512-wide K chunks (multiples of 256 keep lane slices aligned).
    for c in (512, 256):
        if d_inner % c == 0 and d_inner // c >= 2:
            return c
    return d_inner


# --------------------------------------------------------------------------
# pallas_call builder (cached + jitted -> no per-call re-trace)
# --------------------------------------------------------------------------
@functools.lru_cache(maxsize=64)
def _build_ffn_call(n_rows, d_model, d_inner, tm, chunk, n_chunks,
                    out_dtype_name, compute_dtype_name, eps,
                    use_buffered_one, vmem_limit):
    out_dtype = jnp.dtype(out_dtype_name)
    compute_dtype = jnp.dtype(compute_dtype_name)

    def const_spec(shape):
        # Constant index_map -> block stays VMEM-resident across grid steps.
        # Single-buffer (Buffered(1)) when supported to reclaim VMEM; the
        # fallback is default-buffered *bf16/compute-dtype* weights, which has
        # the same footprint as single-buffered f32 (safe on v7x).
        if use_buffered_one:
            return pl.BlockSpec(shape, lambda i: (0, 0),
                                pipeline_mode=pl.Buffered(1))
        return pl.BlockSpec(shape, lambda i: (0, 0))

    grid = (pl.cdiv(n_rows, tm),)

    grid_spec = pltpu.PrefetchScalarGridSpec(
        num_scalar_prefetch=0,
        grid=grid,
        in_specs=[
            pl.BlockSpec((tm, d_model), lambda i: (i, 0)),   # x (row-streamed)
            const_spec((d_model, d_inner)),                  # W1 (resident)
            const_spec((1, d_inner)),                        # b1
            const_spec((d_inner, d_model)),                  # W2 (resident)
            const_spec((1, d_model)),                        # b2
            const_spec((1, d_model)),                        # gamma
            const_spec((1, d_model)),                        # beta
        ],
        out_specs=pl.BlockSpec((tm, d_model), lambda i: (i, 0)),
    )

    act_bytes = out_dtype.itemsize
    w_bytes = compute_dtype.itemsize
    cost = pl.CostEstimate(
        flops=4 * n_rows * d_model * d_inner,                # two matmuls
        transcendentals=n_rows * d_inner,                    # tanh in gelu_new
        bytes_accessed=(2 * n_rows * d_model * act_bytes
                        + 2 * d_model * d_inner * w_bytes
                        + (d_inner + 3 * d_model) * 4),
    )

    fn = pl.pallas_call(
        functools.partial(_ffn_kernel, eps=eps, chunk=chunk,
                          n_chunks=n_chunks),
        out_shape=jax.ShapeDtypeStruct((n_rows, d_model), out_dtype),
        grid_spec=grid_spec,
        compiler_params=pltpu.CompilerParams(
            # Independent row tiles -> megacore sharding on v7x.
            dimension_semantics=("parallel",),
            vmem_limit_bytes=vmem_limit,
        ),
        cost_estimate=cost,
    )
    return jax.jit(fn)


# --------------------------------------------------------------------------
# Public wrapper
# --------------------------------------------------------------------------
def xlnet_feed_forward(inp, w1, b1, w2, b2, gamma, beta, *, eps=1e-12,
                       block_rows=None, mxu_dtype=jnp.bfloat16):
    """inp: (..., d_model); w1: (d_model, d_inner); w2: (d_inner, d_model).

    Weights are stored pre-transposed as (in_features, out_features).
    mxu_dtype controls the matmul operand precision (default bf16 fast path);
    accumulation and the GELU/bias/residual/LayerNorm epilogue are f32.
    """
    orig_shape = inp.shape
    d_model = orig_shape[-1]
    x2d = inp.reshape(-1, d_model)
    n_rows = x2d.shape[0]
    d_inner = w1.shape[1]

    compute_dtype = jnp.dtype(mxu_dtype)
    # Guarantee low-precision MXU operands: cast weights host-side (no-op if
    # already in compute_dtype). Biases / LN params stay as given (f32 epilogue).
    w1c = w1.astype(compute_dtype)
    w2c = w2.astype(compute_dtype)
    # TODO(synk): int8 weight path (v6e) / fp8 path (v7x) with per-channel scales.

    out_dtype = jnp.dtype(inp.dtype)
    pack = max(8, 32 // out_dtype.itemsize)      # sublane pack: 8 f32 / 16 bf16

    if block_rows is None:
        block_rows = _default_block_rows(d_inner, compute_dtype.itemsize)
    tm = min(block_rows, n_rows)
    if tm < n_rows:
        tm = max(pack, (tm // pack) * pack)      # pack-aligned row tile
    # v7x: keep >= 2 grid steps so the "parallel" axis feeds both TensorCores.
    if "v7" in _device_kind() and n_rows > pack and pl.cdiv(n_rows, tm) < 2:
        half = -(-n_rows // 2)                   # ceil(n_rows / 2)
        tm = max(pack, ((half + pack - 1) // pack) * pack)

    chunk = _pick_chunk(d_inner)
    n_chunks = d_inner // chunk

    fn = _build_ffn_call(
        int(n_rows), int(d_model), int(d_inner), int(tm), int(chunk),
        int(n_chunks), str(out_dtype), str(compute_dtype), float(eps),
        bool(_supports_buffered_one()), int(_vmem_limit_bytes()))

    out2d = fn(x2d, w1c, b1.reshape(1, -1), w2c, b2.reshape(1, -1),
               gamma.reshape(1, -1), beta.reshape(1, -1))
    return out2d.reshape(orig_shape)


# --------------------------------------------------------------------------
# Pure-JAX reference & test
# --------------------------------------------------------------------------
def _reference(inp, w1, b1, w2, b2, gamma, beta, eps=1e-12):
    x = inp.astype(jnp.float32)
    hp = jax.lax.Precision.HIGHEST
    h = _gelu_new(jnp.dot(x, w1.astype(jnp.float32), precision=hp)
                  + b1.astype(jnp.float32))
    y = jnp.dot(h, w2.astype(jnp.float32), precision=hp) \
        + b2.astype(jnp.float32)
    z = y + x
    mean = jnp.mean(z, axis=-1, keepdims=True)
    var = jnp.mean((z - mean) ** 2, axis=-1, keepdims=True)
    return ((z - mean) * jax.lax.rsqrt(var + eps) * gamma.astype(jnp.float32)
            + beta.astype(jnp.float32))


if __name__ == "__main__":
    # Small config: seq=8, batch=2, d_model=128, d_inner=512
    # (d_inner=512 exercises the chunked-K path: 2 chunks of 256).
    seq_len, batch, d_model, d_inner = 8, 2, 128, 512
    eps = 1e-12

    key = jax.random.PRNGKey(0)
    k_inp, k_w1, k_b1, k_w2, k_b2 = jax.random.split(key, 5)

    inp = jax.random.normal(k_inp, (seq_len, batch, d_model), dtype=jnp.float32)
    # nn.Linear weights, stored pre-transposed as (in, out)
    w1 = jax.random.normal(k_w1, (d_model, d_inner), dtype=jnp.float32) * 0.02
    b1 = jax.random.normal(k_b1, (d_inner,), dtype=jnp.float32) * 0.02
    w2 = jax.random.normal(k_w2, (d_inner, d_model), dtype=jnp.float32) * 0.02
    b2 = jax.random.normal(k_b2, (d_model,), dtype=jnp.float32) * 0.02
    gamma = jnp.ones((d_model,), dtype=jnp.float32)
    beta = jnp.zeros((d_model,), dtype=jnp.float32)

    ref = _reference(inp, w1, b1, w2, b2, gamma, beta, eps=eps)

    # Default path: bf16 MXU operands, f32 accumulation/epilogue.
    out = xlnet_feed_forward(inp, w1, b1, w2, b2, gamma, beta, eps=eps)
    out = jax.block_until_ready(out)
    assert out.shape == inp.shape
    assert jnp.allclose(out, ref, atol=5e-2, rtol=5e-2), \
        "bf16-MXU path mismatch vs reference"

    # Exact-numerics check: f32 MXU operands.
    out_f32 = xlnet_feed_forward(inp, w1, b1, w2, b2, gamma, beta, eps=eps,
                                 mxu_dtype=jnp.float32)
    out_f32 = jax.block_until_ready(out_f32)
    assert jnp.allclose(out_f32, ref, atol=2e-3, rtol=2e-3), \
        "f32-MXU path mismatch vs reference"

    # bf16 end-to-end (bf16 inputs / outputs).
    bf = lambda a: a.astype(jnp.bfloat16)
    out_bf16 = xlnet_feed_forward(bf(inp), bf(w1), bf(b1), bf(w2), bf(b2),
                                  bf(gamma), bf(beta), eps=eps)
    out_bf16 = jax.block_until_ready(out_bf16)
    assert out_bf16.shape == inp.shape
    assert jnp.allclose(out_bf16.astype(jnp.float32), ref,
                        atol=7e-2, rtol=7e-2), "bf16 end-to-end mismatch"

    print("KERNEL_OK")
</pallas_src>

<mosaic_0001>
module attributes {stable_mosaic.version = 11 : i64} {
  func.func @_ffn_kernel(%arg0: i32, %arg1: memref<16x128xf32, #tpu.memory_space<vmem>>, %arg2: memref<128x512xbf16, #tpu.memory_space<vmem>>, %arg3: memref<1x512xf32, #tpu.memory_space<vmem>>, %arg4: memref<512x128xbf16, #tpu.memory_space<vmem>>, %arg5: memref<1x128xf32, #tpu.memory_space<vmem>>, %arg6: memref<1x128xf32, #tpu.memory_space<vmem>>, %arg7: memref<1x128xf32, #tpu.memory_space<vmem>>, %arg8: memref<16x128xf32, #tpu.memory_space<vmem>>) attributes {dimension_semantics = [#tpu.dimension_semantics<parallel>], iteration_bounds = array<i64: 1>, scalar_prefetch = 0 : i64, scratch_operands = 0 : i64, tpu.core_type = #tpu.core_type<tc>, window_params = [{transform_indices = @transform_0, window_bounds = array<i64: 16, 128>}, {pipeline_mode = #tpu.pipeline_mode<synchronous>, transform_indices = @transform_1, window_bounds = array<i64: 128, 512>}, {pipeline_mode = #tpu.pipeline_mode<synchronous>, transform_indices = @transform_2, window_bounds = array<i64: 1, 512>}, {pipeline_mode = #tpu.pipeline_mode<synchronous>, transform_indices = @transform_3, window_bounds = array<i64: 512, 128>}, {pipeline_mode = #tpu.pipeline_mode<synchronous>, transform_indices = @transform_4, window_bounds = array<i64: 1, 128>}, {pipeline_mode = #tpu.pipeline_mode<synchronous>, transform_indices = @transform_5, window_bounds = array<i64: 1, 128>}, {pipeline_mode = #tpu.pipeline_mode<synchronous>, transform_indices = @transform_6, window_bounds = array<i64: 1, 128>}, {transform_indices = @transform_7, window_bounds = array<i64: 16, 128>}]} {
    %c0 = arith.constant 0 : index
    %c0_0 = arith.constant 0 : index
    %0 = vector.load %arg1[%c0, %c0_0] : memref<16x128xf32, #tpu.memory_space<vmem>>, vector<16x128xf32>
    %1 = arith.truncf %0 : vector<16x128xf32> to vector<16x128xbf16>
    %c0_1 = arith.constant 0 : index
    %c0_2 = arith.constant 0 : index
    %2 = vector.load %arg2[%c0_1, %c0_2] : memref<128x512xbf16, #tpu.memory_space<vmem>>, vector<128x256xbf16>
    %cst = arith.constant dense<0.000000e+00> : vector<16x256xf32>
    %3 = tpu.matmul %1, %2, %cst {dimension_numbers = #tpu.dot_dimension_numbers<[1], [0], [0], [1], [0, 0, 1, 1], [], []>} : vector<16x128xbf16>, vector<128x256xbf16>, vector<16x256xf32> -> vector<16x256xf32>
    %c0_3 = arith.constant 0 : index
    %c0_4 = arith.constant 0 : index
    %4 = vector.load %arg3[%c0_3, %c0_4] : memref<1x512xf32, #tpu.memory_space<vmem>>, vector<1x256xf32>
    %5 = vector.broadcast %4 : vector<1x256xf32> to vector<16x256xf32>
    %6 = arith.addf %3, %5 : vector<16x256xf32>
    %cst_5 = arith.constant 5.000000e-01 : f32
    %7 = vector.broadcast %cst_5 : f32 to vector<16x256xf32>
    %8 = arith.mulf %7, %6 : vector<16x256xf32>
    %cst_6 = arith.constant 4.471500e-02 : f32
    %9 = vector.broadcast %cst_6 : f32 to vector<16x256xf32>
    %10 = arith.mulf %9, %6 : vector<16x256xf32>
    %11 = arith.mulf %10, %6 : vector<16x256xf32>
    %12 = arith.mulf %11, %6 : vector<16x256xf32>
    %13 = arith.addf %6, %12 : vector<16x256xf32>
    %cst_7 = arith.constant 0.797884583 : f32
    %14 = vector.broadcast %cst_7 : f32 to vector<16x256xf32>
    %15 = arith.mulf %14, %13 : vector<16x256xf32>
    %16 = math.tanh %15 : vector<16x256xf32>
    %cst_8 = arith.constant 1.000000e+00 : f32
    %17 = vector.broadcast %cst_8 : f32 to vector<16x256xf32>
    %18 = arith.addf %17, %16 : vector<16x256xf32>
    %19 = arith.mulf %8, %18 : vector<16x256xf32>
    %c0_9 = arith.constant 0 : index
    %c0_10 = arith.constant 0 : index
    %20 = vector.load %arg4[%c0_9, %c0_10] : memref<512x128xbf16, #tpu.memory_space<vmem>>, vector<256x128xbf16>
    %21 = arith.truncf %19 : vector<16x256xf32> to vector<16x256xbf16>
    %cst_11 = arith.constant dense<0.000000e+00> : vector<16x128xf32>
    %22 = tpu.matmul %21, %20, %cst_11 {dimension_numbers = #tpu.dot_dimension_numbers<[1], [0], [0], [1], [0, 0, 1, 1], [], []>} : vector<16x256xbf16>, vector<256x128xbf16>, vector<16x128xf32> -> vector<16x128xf32>
    %c0_12 = arith.constant 0 : index
    %c256 = arith.constant 256 : index
    %23 = vector.load %arg2[%c0_12, %c256] : memref<128x512xbf16, #tpu.memory_space<vmem>>, vector<128x256xbf16>
    %cst_13 = arith.constant dense<0.000000e+00> : vector<16x256xf32>
    %24 = tpu.matmul %1, %23, %cst_13 {dimension_numbers = #tpu.dot_dimension_numbers<[1], [0], [0], [1], [0, 0, 1, 1], [], []>} : vector<16x128xbf16>, vector<128x256xbf16>, vector<16x256xf32> -> vector<16x256xf32>
    %c0_14 = arith.constant 0 : index
    %c256_15 = arith.constant 256 : index
    %25 = vector.load %arg3[%c0_14, %c256_15] : memref<1x512xf32, #tpu.memory_space<vmem>>, vector<1x256xf32>
    %26 = vector.broadcast %25 : vector<1x256xf32> to vector<16x256xf32>
    %27 = arith.addf %24, %26 : vector<16x256xf32>
    %cst_16 = arith.constant 5.000000e-01 : f32
    %28 = vector.broadcast %cst_16 : f32 to vector<16x256xf32>
    %29 = arith.mulf %28, %27 : vector<16x256xf32>
    %cst_17 = arith.constant 4.471500e-02 : f32
    %30 = vector.broadcast %cst_17 : f32 to vector<16x256xf32>
    %31 = arith.mulf %30, %27 : vector<16x256xf32>
    %32 = arith.mulf %31, %27 : vector<16x256xf32>
    %33 = arith.mulf %32, %27 : vector<16x256xf32>
    %34 = arith.addf %27, %33 : vector<16x256xf32>
    %cst_18 = arith.constant 0.797884583 : f32
    %35 = vector.broadcast %cst_18 : f32 to vector<16x256xf32>
    %36 = arith.mulf %35, %34 : vector<16x256xf32>
    %37 = math.tanh %36 : vector<16x256xf32>
    %cst_19 = arith.constant 1.000000e+00 : f32
    %38 = vector.broadcast %cst_19 : f32 to vector<16x256xf32>
    %39 = arith.addf %38, %37 : vector<16x256xf32>
    %40 = arith.mulf %29, %39 : vector<16x256xf32>
    %c256_20 = arith.constant 256 : index
    %c0_21 = arith.constant 0 : index
    %41 = vector.load %arg4[%c256_20, %c0_21] : memref<512x128xbf16, #tpu.memory_space<vmem>>, vector<256x128xbf16>
    %42 = arith.truncf %40 : vector<16x256xf32> to vector<16x256xbf16>
    %cst_22 = arith.constant dense<0.000000e+00> : vector<16x128xf32>
    %43 = tpu.matmul %42, %41, %cst_22 {dimension_numbers = #tpu.dot_dimension_numbers<[1], [0], [0], [1], [0, 0, 1, 1], [], []>} : vector<16x256xbf16>, vector<256x128xbf16>, vector<16x128xf32> -> vector<16x128xf32>
    %44 = arith.addf %22, %43 : vector<16x128xf32>
    %c0_23 = arith.constant 0 : index
    %c0_24 = arith.constant 0 : index
    %45 = vector.load %arg5[%c0_23, %c0_24] : memref<1x128xf32, #tpu.memory_space<vmem>>, vector<1x128xf32>
    %46 = vector.broadcast %45 : vector<1x128xf32> to vector<16x128xf32>
    %47 = arith.addf %44, %46 : vector<16x128xf32>
    %c0_25 = arith.constant 0 : index
    %c0_26 = arith.constant 0 : index
    %48 = vector.load %arg1[%c0_25, %c0_26] : memref<16x128xf32, #tpu.memory_space<vmem>>, vector<16x128xf32>
    %49 = arith.addf %47, %48 : vector<16x128xf32>
    %cst_27 = arith.constant dense<0.000000e+00> : vector<16xf32>
    %50 = vector.multi_reduction <add>, %49, %cst_27 [1] : vector<16x128xf32> to vector<16xf32>
    %51 = vector.shape_cast %50 : vector<16xf32> to vector<16x1xf32>
    %cst_28 = arith.constant 1.280000e+02 : f32
    %52 = vector.broadcast %cst_28 : f32 to vector<16x1xf32>
    %53 = arith.divf %51, %52 : vector<16x1xf32>
    %54 = arith.mulf %49, %49 : vector<16x128xf32>
    %cst_29 = arith.constant dense<0.000000e+00> : vector<16xf32>
    %55 = vector.multi_reduction <add>, %54, %cst_29 [1] : vector<16x128xf32> to vector<16xf32>
    %56 = vector.shape_cast %55 : vector<16xf32> to vector<16x1xf32>
    %cst_30 = arith.constant 1.280000e+02 : f32
    %57 = vector.broadcast %cst_30 : f32 to vector<16x1xf32>
    %58 = arith.divf %56, %57 : vector<16x1xf32>
    %59 = arith.mulf %53, %53 : vector<16x1xf32>
    %60 = arith.subf %58, %59 : vector<16x1xf32>
    %cst_31 = arith.constant 0.000000e+00 : f32
    %61 = vector.broadcast %cst_31 : f32 to vector<16x1xf32>
    %62 = arith.maximumf %60, %61 : vector<16x1xf32>
    %cst_32 = arith.constant 9.99999996E-13 : f32
    %63 = vector.broadcast %cst_32 : f32 to vector<16x1xf32>
    %64 = arith.addf %62, %63 : vector<16x1xf32>
    %65 = math.rsqrt %64 : vector<16x1xf32>
    %66 = vector.broadcast %53 : vector<16x1xf32> to vector<16x128xf32>
    %67 = arith.subf %49, %66 : vector<16x128xf32>
    %68 = vector.broadcast %65 : vector<16x1xf32> to vector<16x128xf32>
    %69 = arith.mulf %67, %68 : vector<16x128xf32>
    %c0_33 = arith.constant 0 : index
    %c0_34 = arith.constant 0 : index
    %70 = vector.load %arg6[%c0_33, %c0_34] : memref<1x128xf32, #tpu.memory_space<vmem>>, vector<1x128xf32>
    %71 = vector.broadcast %70 : vector<1x128xf32> to vector<16x128xf32>
    %72 = arith.mulf %69, %71 : vector<16x128xf32>
    %c0_35 = arith.constant 0 : index
    %c0_36 = arith.constant 0 : index
    %73 = vector.load %arg7[%c0_35, %c0_36] : memref<1x128xf32, #tpu.memory_space<vmem>>, vector<1x128xf32>
    %74 = vector.broadcast %73 : vector<1x128xf32> to vector<16x128xf32>
    %75 = arith.addf %72, %74 : vector<16x128xf32>
    %c0_37 = arith.constant 0 : index
    %c0_38 = arith.constant 0 : index
    %76 = vector.load %arg8[%c0_37, %c0_38] : memref<16x128xf32, #tpu.memory_space<vmem>>, vector<16x128xf32>
    tpu.vector_store %arg8[%c0_37, %c0_38], %75 {strides = array<i32>} : memref<16x128xf32, #tpu.memory_space<vmem>>, vector<16x128xf32>,
    return
  }
  func.func @transform_0(%arg0: i32) -> (i32, i32) {
    %c0_i32 = arith.constant 0 : i32
    %c0_i32_0 = arith.constant 0 : i32
    return %arg0, %c0_i32 : i32, i32
  }
  func.func @transform_1(%arg0: i32) -> (i32, i32) {
    %c0_i32 = arith.constant 0 : i32
    %c0_i32_0 = arith.constant 0 : i32
    %c0_i32_1 = arith.constant 0 : i32
    return %c0_i32, %c0_i32_0 : i32, i32
  }
  func.func @transform_2(%arg0: i32) -> (i32, i32) {
    %c0_i32 = arith.constant 0 : i32
    %c0_i32_0 = arith.constant 0 : i32
    %c0_i32_1 = arith.constant 0 : i32
    return %c0_i32, %c0_i32_0 : i32, i32
  }
  func.func @transform_3(%arg0: i32) -> (i32, i32) {
    %c0_i32 = arith.constant 0 : i32
    %c0_i32_0 = arith.constant 0 : i32
    %c0_i32_1 = arith.constant 0 : i32
    return %c0_i32, %c0_i32_0 : i32, i32
  }
  func.func @transform_4(%arg0: i32) -> (i32, i32) {
    %c0_i32 = arith.constant 0 : i32
    %c0_i32_0 = arith.constant 0 : i32
    %c0_i32_1 = arith.constant 0 : i32
    return %c0_i32, %c0_i32_0 : i32, i32
  }
  func.func @transform_5(%arg0: i32) -> (i32, i32) {
    %c0_i32 = arith.constant 0 : i32
    %c0_i32_0 = arith.constant 0 : i32
    %c0_i32_1 = arith.constant 0 : i32
    return %c0_i32, %c0_i32_0 : i32, i32
  }
  func.func @transform_6(%arg0: i32) -> (i32, i32) {
    %c0_i32 = arith.constant 0 : i32
    %c0_i32_0 = arith.constant 0 : i32
    %c0_i32_1 = arith.constant 0 : i32
    return %c0_i32, %c0_i32_0 : i32, i32
  }
  func.func @transform_7(%arg0: i32) -> (i32, i32) {
    %c0_i32 = arith.constant 0 : i32
    %c0_i32_0 = arith.constant 0 : i32
    return %arg0, %c0_i32 : i32, i32
  }
}

</mosaic_0001>

<bundles_post_ra>
// kernel: tpu_custom_call.1
= control target key start
LH: loop header
LB: loop body
LE: loop exit
PB: predicated region body
PF: predicated region fallthrough
CT: control target
= control target key end

     0   :  { %12 = vsyncpa [#allocation3], 0  ;;  %s1328_s0 = inlined_call_operand.hbm [shape: f32[16,128], index: 0, kind: input, shape index: {}]   ;;  %s1329_s1 = inlined_call_operand.hbm [shape: bf16[128,512], index: 1, kind: input, shape index: {}]   ;;  %s1330_s2 = inlined_call_operand.hbm [shape: f32[1,512], index: 2, kind: input, shape index: {}]   ;;  %s1331_s3 = inlined_call_operand.hbm [shape: bf16[512,128], index: 3, kind: input, shape index: {}]   ;;  %s1332_s4 = inlined_call_operand.vmem [shape: f32[1,128], index: 4, kind: input, shape index: {}]   ;;  %s1333_s5 = inlined_call_operand.vmem [shape: f32[1,128], index: 5, kind: input, shape index: {}]   ;;  %s1334_s6 = inlined_call_operand.vmem [shape: f32[1,128], index: 6, kind: input, shape index: {}]   ;;  %s1335_s7 = inlined_call_operand.hbm [shape: f32[16,128], index: 7, kind: output, shape index: {}]  }
   0x1   :  { %13 = vsyncpa [#allocation6], 0 }
   0x2   :  { %14 = vsyncpa [#allocation9], 0 }
   0x3   :  { %15 = vsyncpa [#allocation4], 0  ;;  %s1210_s24 = smov [#allocation5]  }
   0x4   :  { %s33_s25 = sshll.u32 %s1210_s24, 4  ;;  %s34_s25 = int_to_ptr.vmem [resolvable:$true] %s33_s25 }
   0x5   :  { %s1110_s26 = scalar_lea.vmem %s34_s25, 4096  ;;  %p1115_p1 = scmp.lt.s32.totalorder %s34_s25, %s34_s25 }
   0x6   :  { %p1111_p0 = scmp.ne.s32.totalorder %s34_s25, %s1110_s26  ;;  %p1116_p2 = scmp.lt.s32.totalorder %s1110_s26, %s1110_s26 }
   0x8   :  { %p1117_p3 = por %p1116_p2, %p1115_p1 }
   0xa   :  { %p1118_p4 = pnand %p1117_p3, %p1111_p0 }
   0xc   :  { %1121 = shalt.err (!%p1118_p4)
}
   0xd   :  { %s1211_s27 = smov 256   ;;  %s1212_s28 = smov 16  }
   0xe   :  { %39 = dma.hbm_to_vmem [thread:$0]  %s1329_s1, 4096, %s34_s25, [#allocation6], %s1211_s27, %s1211_s27, %s1212_s28  }
   0xf   :  { %s1213_s8 = smov [#allocation2]  }
  0x10   :  { %s21_s9 = sshll.u32 %s1213_s8, 4  ;;  %s22_s9 = int_to_ptr.vmem [resolvable:$true] %s21_s9 }
  0x11   :  { %s1130_s10 = scalar_lea.vmem %s22_s9, 256  ;;  %p1135_p6 = scmp.lt.s32.totalorder %s22_s9, %s22_s9 }
  0x12   :  { %p1131_p5 = scmp.ne.s32.totalorder %s22_s9, %s1130_s10  ;;  %p1136_p7 = scmp.lt.s32.totalorder %s1130_s10, %s1130_s10 }
  0x14   :  { %p1137_p8 = por %p1136_p7, %p1135_p6 }
  0x16   :  { %p1138_p9 = pnand %p1137_p8, %p1131_p5 }
  0x18   :  { %1141 = shalt.err (!%p1138_p9)
}
  0x19   :  { %s1214_s11 = smov 128   ;;  %s1215_s12 = smov 8  }
  0x1a   :  { %27 = dma.hbm_to_vmem [thread:$0]  %s1328_s0, 256, %s22_s9, [#allocation3], %s1214_s11, %s1214_s11, %s1215_s12  }
  0x1b   :  { %s1216_s1 = smov [#allocation7]   ;;  %s1217_s16 = smov [#allocation8]  }
  0x1c   :  { %s46_s15 = sshll.u32 %s1216_s1, 4  ;;  %s55_s17 = sshll.u32 %s1217_s16, 4  ;;  %s47_s15 = int_to_ptr.vmem [resolvable:$true] %s46_s15  ;;  %s56_s17 = int_to_ptr.vmem [resolvable:$true] %s55_s17 }
  0x1d   :  { %s1150_s18 = scalar_lea.vmem %s47_s15, 64  ;;  %p1155_p11 = scmp.lt.s32.totalorder %s47_s15, %s47_s15 }
  0x1e   :  { %p1151_p10 = scmp.ne.s32.totalorder %s47_s15, %s1150_s18  ;;  %p1156_p12 = scmp.lt.s32.totalorder %s1150_s18, %s1150_s18 }
  0x20   :  { %p1157_p13 = por %p1156_p12, %p1155_p11 }
  0x22   :  { %p1158_p0 = pnand %p1157_p13, %p1151_p10 }
  0x24   :  { %1161 = shalt.err (!%p1158_p0)
}
  0x25   :  { %49 = dma.hbm_to_vmem [thread:$0]  %s1330_s2, 64, %s47_s15, [#allocation6]  }
  0x26   :  { %s1170_s21 = scalar_lea.vmem %s56_s17, 4096  ;;  %p1175_p2 = scmp.lt.s32.totalorder %s56_s17, %s56_s17 }
  0x27   :  { %p1171_p1 = scmp.ne.s32.totalorder %s56_s17, %s1170_s21  ;;  %p1176_p3 = scmp.lt.s32.totalorder %s1170_s21, %s1170_s21 }
  0x29   :  { %p1177_p4 = por %p1176_p3, %p1175_p2 }
  0x2b   :  { %p1178_p5 = pnand %p1177_p4, %p1171_p1 }
  0x2d   :  { %1181 = shalt.err (!%p1178_p5)
}
  0x2e   :  { %s1218_s0 = smov 64   ;;  %s1219_s22 = smov 4  }
  0x2f   :  { %61 = dma.hbm_to_vmem [thread:$0]  %s1331_s3, 4096, %s56_s17, [#allocation9], %s1218_s0, %s1218_s0, %s1219_s22  }
  0x30   :  { %1202 = dma.done.wait [#allocation3], 256  }
  0x31   :  { %1203 = vsyncadd [#allocation3], 4294967040 }
  0x32   :  { %1204 = dma.done.wait [#allocation6], 4160  }
  0x33   :  { %1205 = vsyncadd [#allocation6], 4294963136 }
  0x34   :  { %1206 = dma.done.wait [#allocation9], 4096  }
  0x35   :  { %1207 = vsyncadd [#allocation9], 4294963200  ;;  %v1220_v0 = vmov 0   ;;  %v1002_v1 = vld [vmem:[#allocation5 + $0xe4] ss:$16 sps:$4 sm:$0xff]   ;;  %v1279_v34 = vld [vmem:[#allocation2 + $0x8] sm:$0xff] }
  0x36   :  { %224 = vmatprep.mubr.bf16.mxu0 %v1220_v0  ;;  %445 = vmatprep.mubr.bf16.mxu1 %v1220_v0  ;;  %v1004_v2 = vld [vmem:[#allocation5 + $0xec] ss:$16 sps:$4 sm:$0xff]   ;;  %v1006_v3 = vld [vmem:[#allocation5 + $0xe0] ss:$16 sps:$4 sm:$0xff]   ;;  %v1007_v4 = vld [vmem:[#allocation5 + $0xe8] ss:$16 sps:$4 sm:$0xff]  }
  0x37   :  { %192 = vmatprep.subr.bf16.mxu0 %v1002_v1  ;;  %413 = vmatprep.subr.bf16.mxu1 %v1004_v2  ;;  %v1008_v5 = vld [vmem:[#allocation5 + $0xc4] ss:$16 sps:$4 sm:$0xff]   ;;  %v1010_v6 = vld [vmem:[#allocation5 + $0xcc] ss:$16 sps:$4 sm:$0xff]   ;;  %v1012_v7 = vld [vmem:[#allocation5 + $0xc0] ss:$16 sps:$4 sm:$0xff]  }
  0x38   :  { %193 = vmatpush1.bf16.msra.mxu0 %v1006_v3  ;;  %414 = vmatpush1.bf16.msra.mxu1 %v1007_v4  ;;  %v1013_v8 = vld [vmem:[#allocation5 + $0xc8] ss:$16 sps:$4 sm:$0xff]   ;;  %v1014_v9 = vld [vmem:[#allocation5 + $0xa4] ss:$16 sps:$4 sm:$0xff]   ;;  %v1016_v10 = vld [vmem:[#allocation5 + $0xac] ss:$16 sps:$4 sm:$0xff]   ;;  %v102_v4 = vlaneseq }
  0x39   :  { %194 = vmatprep.subr.bf16.mxu0 %v1008_v5  ;;  %415 = vmatprep.subr.bf16.mxu1 %v1010_v6  ;;  %v1018_v11 = vld [vmem:[#allocation5 + $0xa0] ss:$16 sps:$4 sm:$0xff]   ;;  %v1019_v12 = vld [vmem:[#allocation5 + $0xa8] ss:$16 sps:$4 sm:$0xff]   ;;  %v1020_v13 = vld [vmem:[#allocation5 + $0x84] ss:$16 sps:$4 sm:$0xff]  }
  0x3a   :  { %v1022_v14 = vld [vmem:[#allocation5 + $0x8c] ss:$16 sps:$4 sm:$0xff]   ;;  %v1024_v15 = vld [vmem:[#allocation5 + $0x80] ss:$16 sps:$4 sm:$0xff]   ;;  %v1025_v16 = vld [vmem:[#allocation5 + $0x88] ss:$16 sps:$4 sm:$0xff]  }
  0x3b   :  { %v1026_v17 = vld [vmem:[#allocation5 + $0x64] ss:$16 sps:$4 sm:$0xff]   ;;  %v1028_v18 = vld [vmem:[#allocation5 + $0x6c] ss:$16 sps:$4 sm:$0xff]   ;;  %v1030_v19 = vld [vmem:[#allocation5 + $0x60] ss:$16 sps:$4 sm:$0xff]  }
  0x3c   :  { %195 = vmatpush1.bf16.msra.mxu0 %v1012_v7  ;;  %416 = vmatpush1.bf16.msra.mxu1 %v1013_v8  ;;  %v1031_v20 = vld [vmem:[#allocation5 + $0x68] ss:$16 sps:$4 sm:$0xff]   ;;  %v1032_v21 = vld [vmem:[#allocation5 + $0x44] ss:$16 sps:$4 sm:$0xff]   ;;  %v1034_v22 = vld [vmem:[#allocation5 + $0x4c] ss:$16 sps:$4 sm:$0xff]  }
  0x3d   :  { %196 = vmatprep.subr.bf16.mxu0 %v1014_v9  ;;  %417 = vmatprep.subr.bf16.mxu1 %v1016_v10  ;;  %v1036_v23 = vld [vmem:[#allocation5 + $0x40] ss:$16 sps:$4 sm:$0xff]   ;;  %v1037_v24 = vld [vmem:[#allocation5 + $0x48] ss:$16 sps:$4 sm:$0xff]   ;;  %v1038_v25 = vld [vmem:[#allocation5 + $0x24] ss:$16 sps:$4 sm:$0xff]  }
  0x3e   :  { %v1040_v26 = vld [vmem:[#allocation5 + $0x2c] ss:$16 sps:$4 sm:$0xff]   ;;  %v1042_v27 = vld [vmem:[#allocation5 + $0x20] ss:$16 sps:$4 sm:$0xff]   ;;  %v1043_v28 = vld [vmem:[#allocation5 + $0x28] ss:$16 sps:$4 sm:$0xff]  }
  0x3f   :  { %v1044_v29 = vld [vmem:[#allocation5 + $0x4] ss:$16 sps:$4 sm:$0xff]   ;;  %v1046_v30 = vld [vmem:[#allocation5 + $0xc] ss:$16 sps:$4 sm:$0xff]   ;;  %v1048_v31 = vld [vmem:[#allocation5] ss:$16 sps:$4 sm:$0xff]  }
  0x40   :  { %197 = vmatpush1.bf16.msra.mxu0 %v1018_v11  ;;  %418 = vmatpush1.bf16.msra.mxu1 %v1019_v12  ;;  %v1049_v32 = vld [vmem:[#allocation5 + $0x8] ss:$16 sps:$4 sm:$0xff]   ;;  %v1277_v33 = vld [vmem:[#allocation2] sm:$0xff]  ;;  %v1050_v36 = vld [vmem:[#allocation8 + $0xf8] sm:$0xff]   ;;  %v103_v5 = vshrl.u32 %v102_v4, 7  ;;  %s1221_s28 = smov [#allocation10]  }
  0x41   :  { %198 = vmatprep.subr.bf16.mxu0 %v1020_v13  ;;  %419 = vmatprep.subr.bf16.mxu1 %v1022_v14  ;;  %v83_v35 = vpack.c.bf16 %v1279_v34, %v1277_v33  ;;  %v1051_v37 = vld [vmem:[#allocation8 + $0x78] sm:$0xff]   ;;  %v1054_v40 = vld [vmem:[#allocation8 + $0xf0] sm:$0xff]   ;;  %v1058_v44 = vld [vmem:[#allocation8 + $0xe8] sm:$0xff]   ;;  %s865_s29 = sshll.u32 %s1221_s28, 4  ;;  %s866_s29 = int_to_ptr.vmem [resolvable:$true] %s865_s29 }
  0x42   :  { %v1052_v38 = vld [vmem:[#allocation8 + $0xb8] sm:$0xff]   ;;  %v1055_v41 = vld [vmem:[#allocation8 + $0x70] sm:$0xff]   ;;  %v1059_v45 = vld [vmem:[#allocation8 + $0x68] sm:$0xff]   ;;  %v104_v6 = vsub.s32 0, %v103_v5  ;;  %v108_v9 = vsub.s32 1, %v103_v5  ;;  %s1182_s30 = scalar_lea.vmem %s866_s29, 256  ;;  %p1187_p7 = scmp.lt.s32.totalorder %s866_s29, %s866_s29 }
  0x43   :  { %v1053_v39 = vld [vmem:[#allocation8 + $0x38] sm:$0xff]   ;;  %v1056_v42 = vld [vmem:[#allocation8 + $0xb0] sm:$0xff]   ;;  %v1060_v46 = vld [vmem:[#allocation8 + $0xa8] sm:$0xff]   ;;  %p1183_p6 = scmp.ne.s32.totalorder %s866_s29, %s1182_s30  ;;  %p1188_p8 = scmp.lt.s32.totalorder %s1182_s30, %s1182_s30 }
  0x44   :  { %199 = vmatpush1.bf16.msra.mxu0 %v1024_v15  ;;  %420 = vmatpush1.bf16.msra.mxu1 %v1025_v16  ;;  %v1057_v43 = vld [vmem:[#allocation8 + $0x30] sm:$0xff]   ;;  %v1061_v47 = vld [vmem:[#allocation8 + $0x28] sm:$0xff]   ;;  %v1062_v48 = vld [vmem:[#allocation8 + $0xe0] sm:$0xff]  }
  0x45   :  { %200 = vmatprep.subr.bf16.mxu0 %v1026_v17  ;;  %421 = vmatprep.subr.bf16.mxu1 %v1028_v18  ;;  %v1063_v49 = vld [vmem:[#allocation8 + $0x60] sm:$0xff]   ;;  %v1066_v52 = vld [vmem:[#allocation8 + $0xd8] sm:$0xff]   ;;  %v1070_v56 = vld [vmem:[#allocation8 + $0xd0] sm:$0xff]   ;;  %p1189_p9 = por %p1188_p8, %p1187_p7 }
  0x46   :  { %v1064_v50 = vld [vmem:[#allocation8 + $0xa0] sm:$0xff]   ;;  %v1067_v53 = vld [vmem:[#allocation8 + $0x58] sm:$0xff]   ;;  %v1071_v57 = vld [vmem:[#allocation8 + $0x50] sm:$0xff]  }
  0x47   :  { %v1065_v51 = vld [vmem:[#allocation8 + $0x20] sm:$0xff]   ;;  %v1068_v54 = vld [vmem:[#allocation8 + $0x98] sm:$0xff]   ;;  %v1072_v58 = vld [vmem:[#allocation8 + $0x90] sm:$0xff]   ;;  %p1190_p10 = pnand %p1189_p9, %p1183_p6 }
  0x48   :  { %201 = vmatpush1.bf16.msra.mxu0 %v1030_v19  ;;  %422 = vmatpush1.bf16.msra.mxu1 %v1031_v20  ;;  %v1069_v55 = vld [vmem:[#allocation8 + $0x18] sm:$0xff]   ;;  %v1073_v59 = vld [vmem:[#allocation8 + $0x10] sm:$0xff]   ;;  %v1074_v60 = vld [vmem:[#allocation8 + $0xc8] sm:$0xff]  }
  0x49   :  { %202 = vmatprep.subr.bf16.mxu0 %v1032_v21  ;;  %423 = vmatprep.subr.bf16.mxu1 %v1034_v22  ;;  %v1075_v61 = vld [vmem:[#allocation8 + $0x48] sm:$0xff]   ;;  %v1078_v0 = vld [vmem:[#allocation8 + $0xc0] sm:$0xff]   ;;  %v100_v7 = vld [vmem:[#allocation7] sm:$0x3] }
  0x4a   :  { %v1076_v62 = vld [vmem:[#allocation8 + $0x88] sm:$0xff]   ;;  %v1079_v1 = vld [vmem:[#allocation8 + $0x40] sm:$0xff]   ;;  %v321_v8 = vld [vmem:[#allocation7 + $0x2] sm:$0x3]  ;;  %v105_v10 = vrot.slane %v100_v7, %v104_v6  ;;  %v109_v12 = vrot.slane %v100_v7, %v108_v9 }
  0x4b   :  { %v1077_v63 = vld [vmem:[#allocation8 + $0x8] sm:$0xff]   ;;  %v1080_v2 = vld [vmem:[#allocation8 + $0x80] sm:$0xff]   ;;  %v326_v11 = vrot.slane %v321_v8, %v104_v6  ;;  %v330_v13 = vrot.slane %v321_v8, %v108_v9 }
  0x4c   :  { %203 = vmatpush1.bf16.msra.mxu0 %v1036_v23  ;;  %424 = vmatpush1.bf16.msra.mxu1 %v1037_v24  ;;  %v1081_v3 = vld [vmem:[#allocation8] sm:$0xff]  }
  0x4d   :  { %204 = vmatprep.subr.bf16.mxu0 %v1038_v25  ;;  %425 = vmatprep.subr.bf16.mxu1 %v1040_v26 }
  0x50   :  { %205 = vmatpush1.bf16.msra.mxu0 %v1042_v27  ;;  %426 = vmatpush1.bf16.msra.mxu1 %v1043_v28 }
  0x51   :  { %206 = vmatprep.subr.bf16.mxu0 %v1044_v29  ;;  %427 = vmatprep.subr.bf16.mxu1 %v1046_v30 }
  0x54   :  { %207 = vmatpush1.bf16.msra.mxu0 %v1048_v31  ;;  %428 = vmatpush1.bf16.msra.mxu1 %v1049_v32 }
  0x55   :  { %946 = vmatprep.subr.bf16.mxu0 %v1050_v36  ;;  %968 = vmatprep.subr.bf16.mxu1 %v1051_v37 }
  0x57   :  { %225 = vmatmul.mubr.bf16.vlgmr.msra.gmra.mxu0 %v83_v35  ;;  %446 = vmatmul.mubr.bf16.vlgmr.msra.gmra.mxu1 %v83_v35 }
  0x58   :  { %947 = vmatpush3.bf16.msra.mxu0 %v1052_v38  ;;  %969 = vmatpush3.bf16.msra.mxu1 %v1053_v39 }
  0x59   :  { %948 = vmatprep.subr.bf16.mxu0 %v1054_v40  ;;  %970 = vmatprep.subr.bf16.mxu1 %v1055_v41 }
  0x5c   :  { %949 = vmatpush3.bf16.msra.mxu0 %v1056_v42  ;;  %971 = vmatpush3.bf16.msra.mxu1 %v1057_v43 }
  0x5d   :  { %950 = vmatprep.subr.bf16.mxu0 %v1058_v44  ;;  %972 = vmatprep.subr.bf16.mxu1 %v1059_v45 }
  0x60   :  { %951 = vmatpush3.bf16.msra.mxu0 %v1060_v46  ;;  %973 = vmatpush3.bf16.msra.mxu1 %v1061_v47 }
  0x61   :  { %952 = vmatprep.subr.bf16.mxu0 %v1062_v48  ;;  %974 = vmatprep.subr.bf16.mxu1 %v1063_v49 }
  0x64   :  { %953 = vmatpush3.bf16.msra.mxu0 %v1064_v50  ;;  %975 = vmatpush3.bf16.msra.mxu1 %v1065_v51 }
  0x65   :  { %954 = vmatprep.subr.bf16.mxu0 %v1066_v52  ;;  %976 = vmatprep.subr.bf16.mxu1 %v1067_v53 }
  0x68   :  { %955 = vmatpush3.bf16.msra.mxu0 %v1068_v54  ;;  %977 = vmatpush3.bf16.msra.mxu1 %v1069_v55 }
  0x69   :  { %956 = vmatprep.subr.bf16.mxu0 %v1070_v56  ;;  %978 = vmatprep.subr.bf16.mxu1 %v1071_v57 }
  0x6c   :  { %957 = vmatpush3.bf16.msra.mxu0 %v1072_v58  ;;  %979 = vmatpush3.bf16.msra.mxu1 %v1073_v59 }
  0x6d   :  { %958 = vmatprep.subr.bf16.mxu0 %v1074_v60  ;;  %980 = vmatprep.subr.bf16.mxu1 %v1075_v61 }
  0x70   :  { %959 = vmatpush3.bf16.msra.mxu0 %v1076_v62  ;;  %981 = vmatpush3.bf16.msra.mxu1 %v1077_v63 }
  0x71   :  { %960 = vmatprep.subr.bf16.mxu0 %v1078_v0  ;;  %982 = vmatprep.subr.bf16.mxu1 %v1079_v1 }
  0x74   :  { %961 = vmatpush3.bf16.msra.mxu0 %v1080_v2  ;;  %983 = vmatpush3.bf16.msra.mxu1 %v1081_v3 }
 0x117   :  { %v226_v14 = vpop.f32.mrf.mxu0  ;;  %v447_v15 = vpop.f32.mrf.mxu1 }
 0x118   :  { %v1283_v16 = vadd.f32 %v226_v14, %v105_v10  ;;  %v1285_v17 = vadd.f32 %v447_v15, %v326_v11 }
 0x119   :  { %v228_v18 = vpop.f32.mrf.mxu0  ;;  %v449_v19 = vpop.f32.mrf.mxu1 }
 0x11a   :  { %v239_v20 = vmul.f32 0.044715, %v1283_v16  ;;  %v460_v21 = vmul.f32 0.044715, %v1285_v17  ;;  %v229_v22 = vadd.f32 %v228_v18, %v109_v12  ;;  %v1289_v23 = vadd.f32 %v449_v19, %v330_v13 }
 0x11b   :  { %v230_v24 = vpop.f32.mrf.mxu0  ;;  %v451_v25 = vpop.f32.mrf.mxu1  ;;  %v235_v18 = vmul.f32 0.5, %v1283_v16 }
 0x11c   :  { %v243_v26 = vmul.f32 %v239_v20, %v1283_v16  ;;  %v464_v27 = vmul.f32 %v460_v21, %v1285_v17  ;;  %v240_v28 = vmul.f32 0.044715, %v229_v22  ;;  %v461_v29 = vmul.f32 0.044715, %v1289_v23 }
 0x11d   :  { %v231_v30 = vadd.f32 %v230_v24, %v105_v10  ;;  %v1294_v31 = vadd.f32 %v451_v25, %v326_v11  ;;  %v232_v32 = vpop.f32.mrf.mxu0  ;;  %v453_v35 = vpop.f32.mrf.mxu1  ;;  %v236_v14 = vmul.f32 0.5, %v229_v22 }
 0x11e   :  { %v247_v36 = vmul.f32 %v243_v26, %v1283_v16  ;;  %v468_v37 = vmul.f32 %v464_v27, %v1285_v17  ;;  %v244_v38 = vmul.f32 %v240_v28, %v229_v22  ;;  %v465_v39 = vmul.f32 %v461_v29, %v1289_v23 }
 0x11f   :  { %v241_v40 = vmul.f32 0.044715, %v231_v30  ;;  %v462_v41 = vmul.f32 0.044715, %v1294_v31  ;;  %v233_v42 = vadd.f32 %v232_v32, %v109_v12  ;;  %v454_v43 = vadd.f32 %v453_v35, %v330_v13 }
 0x120   :  { %v251_v44 = vadd.f32 %v247_v36, %v1283_v16  ;;  %v472_v45 = vadd.f32 %v468_v37, %v1285_v17  ;;  %v248_v46 = vmul.f32 %v244_v38, %v229_v22  ;;  %v469_v47 = vmul.f32 %v465_v39, %v1289_v23 }
 0x121   :  { %v245_v48 = vmul.f32 %v241_v40, %v231_v30  ;;  %v466_v49 = vmul.f32 %v462_v41, %v1294_v31  ;;  %v242_v50 = vmul.f32 0.044715, %v233_v42  ;;  %v463_v51 = vmul.f32 0.044715, %v454_v43 }
 0x122   :  { %v255_v52 = vmul.f32 0.7978846, %v251_v44  ;;  %v476_v53 = vmul.f32 0.7978846, %v472_v45  ;;  %v473_v54 = vadd.f32 %v469_v47, %v1289_v23  ;;  %v252_v60 = vadd.f32 %v248_v46, %v229_v22 }
 0x123   :  { %v249_v55 = vmul.f32 %v245_v48, %v231_v30  ;;  %v470_v56 = vmul.f32 %v466_v49, %v1294_v31  ;;  %v246_v57 = vmul.f32 %v242_v50, %v233_v42  ;;  %v467_v58 = vmul.f32 %v463_v51, %v454_v43 }
 0x124   :  { %v477_v59 = vmul.f32 0.7978846, %v473_v54  ;;  %1082 = vtanh.f32 %v255_v52  ;;  %v256_v1 = vmul.f32 0.7978846, %v252_v60  ;;  %v237_v25 = vmul.f32 0.5, %v231_v30 }
 0x125   :  { %v253_v61 = vadd.f32 %v249_v55, %v231_v30  ;;  %v474_v62 = vadd.f32 %v470_v56, %v1294_v31  ;;  %v250_v63 = vmul.f32 %v246_v57, %v233_v42  ;;  %1084 = vtanh.f32 %v476_v53  ;;  %v943_v53 = vld [vmem:[%s1332_s4] ss:$0 sm:$0xff] }
 0x126   :  { %v471_v0 = vmul.f32 %v467_v58, %v454_v43  ;;  %1086 = vtanh.f32 %v477_v59  ;;  %v238_v28 = vmul.f32 0.5, %v233_v42  ;;  %v458_v32 = vmul.f32 0.5, %v1294_v31 }
 0x127   :  { %v257_v2 = vmul.f32 0.7978846, %v253_v61  ;;  %v478_v3 = vmul.f32 0.7978846, %v474_v62  ;;  %v254_v4 = vadd.f32 %v250_v63, %v233_v42  ;;  %1088 = vtanh.f32 %v256_v1 }
 0x128   :  { %v475_v5 = vadd.f32 %v471_v0, %v454_v43  ;;  %v457_v36 = vmul.f32 0.5, %v1289_v23  ;;  %v459_v37 = vmul.f32 0.5, %v454_v43  ;;  %v456_v16 = vmul.f32 0.5, %v1285_v17 }
 0x129   :  { %1090 = vtanh.f32 %v257_v2  ;;  %v258_v6 = vmul.f32 0.7978846, %v254_v4 }
 0x12a   :  { %1092 = vtanh.f32 %v478_v3  ;;  %v479_v7 = vmul.f32 0.7978846, %v475_v5 }
 0x12b   :  { %1094 = vtanh.f32 %v258_v6 }
 0x12c   :  { %1096 = vtanh.f32 %v479_v7 }
 0x131   :  { %v1083_v8 = vpop.eup %1082 }
 0x132   :  { %v1085_v9 = vpop.eup %1084  ;;  %v263_v26 = vadd.f32 1.0, %v1083_v8 }
 0x133   :  { %v1087_v10 = vpop.eup %1086  ;;  %v484_v35 = vadd.f32 1.0, %v1085_v9 }
 0x134   :  { %v1089_v11 = vpop.eup %1088  ;;  %v485_v21 = vadd.f32 1.0, %v1087_v10  ;;  %v267_v30 = vmul.f32 %v263_v26, %v235_v18 }
 0x135   :  { %v264_v15 = vadd.f32 1.0, %v1089_v11  ;;  %v488_v47 = vmul.f32 %v484_v35, %v456_v16 }
 0x136   :  { %v1091_v12 = vpop.eup %1090  ;;  %v489_v44 = vmul.f32 %v485_v21, %v457_v36  ;;  %v944_v21 = vld [vmem:[%s1333_s5] ss:$0 sm:$0xff] }
 0x137   :  { %v1093_v13 = vpop.eup %1092  ;;  %v265_v19 = vadd.f32 1.0, %v1091_v12  ;;  %v268_v39 = vmul.f32 %v264_v15, %v236_v14 }
 0x138   :  { %v1095_v20 = vpop.eup %1094  ;;  %v486_v24 = vadd.f32 1.0, %v1093_v13 }
 0x139   :  { %v1097_v27 = vpop.eup %1096  ;;  %v266_v29 = vadd.f32 1.0, %v1095_v20  ;;  %v269_v22 = vmul.f32 %v265_v19, %v237_v25  ;;  %v945_v25 = vld [vmem:[%s1334_s6] ss:$0 sm:$0xff] }
 0x13a   :  { %v487_v38 = vadd.f32 1.0, %v1097_v27  ;;  %v490_v41 = vmul.f32 %v486_v24, %v458_v32 }
 0x13b   :  { %v270_v40 = vmul.f32 %v266_v29, %v238_v28  ;;  %v303_v48 = vpack.c.bf16 %v269_v22, %v267_v30 }
 0x13c   :  { %v491_v45 = vmul.f32 %v487_v38, %v459_v37  ;;  %v524_v31 = vpack.c.bf16 %v490_v41, %v488_v47 }
 0x13d   :  { %v304_v46 = vpack.c.bf16 %v270_v40, %v268_v39 }
 0x13e   :  { %v525_v42 = vpack.c.bf16 %v491_v45, %v489_v44 }
 0x13f   :  { %791 = vmatprep.mubr.bf16.mxu1 %v304_v46 }
 0x140   :  { %654 = vmatprep.mubr.bf16.mxu0 %v525_v42  ;;  %792 = vmatmul.mubr.bf16.vlgmr.msra.gmra.mxu1 %v303_v48 }
 0x141   :  { %655 = vmatmul.mubr.bf16.vlgmr.msra.gmra.mxu0 %v524_v31 }
 0x200   :  { %v984_v23 = vpop.f32.mrf.mxu1 }
 0x201   :  { %v962_v43 = vpop.f32.mrf.mxu0 }
 0x202   :  { %v985_v49 = vpop.f32.mrf.mxu1 }
 0x203   :  { %v963_v50 = vpop.f32.mrf.mxu0  ;;  %v986_v51 = vadd.f32 %v985_v49, %v984_v23 }
 0x204   :  { %v964_v52 = vadd.f32 %v963_v50, %v962_v43  ;;  %v987_v17 = vpop.f32.mrf.mxu1 }
 0x205   :  { %v965_v54 = vpop.f32.mrf.mxu0 }
 0x206   :  { %v794_v55 = vadd.f32 %v986_v51, %v964_v52  ;;  %v988_v56 = vpop.f32.mrf.mxu1 }
 0x207   :  { %v966_v57 = vpop.f32.mrf.mxu0  ;;  %v989_v58 = vadd.f32 %v988_v56, %v987_v17 }
 0x208   :  { %v807_v59 = vadd.f32 %v943_v53, %v794_v55  ;;  %v967_v60 = vadd.f32 %v966_v57, %v965_v54 }
 0x20a   :  { %v797_v61 = vadd.f32 %v989_v58, %v967_v60  ;;  %v809_v62 = vadd.f32 %v807_v59, %v1277_v33 }
 0x20c   :  { %v808_v63 = vadd.f32 %v943_v53, %v797_v61  ;;  %811 = vadd.xlane.f32.xlu0 %v809_v62  ;;  %v818_v0 = vmul.f32 %v809_v62, %v809_v62 }
 0x20e   :  { %820 = vadd.xlane.f32.xlu1 %v818_v0  ;;  %v810_v1 = vadd.f32 %v808_v63, %v1279_v34 }
 0x210   :  { %813 = vadd.xlane.f32.xlu0 %v810_v1  ;;  %v819_v2 = vmul.f32 %v810_v1, %v810_v1 }
 0x212   :  { %822 = vadd.xlane.f32.xlu1 %v819_v2 }
 0x295   :  { %v812_v3 = vpop.xlane.xlu0 %811 }
 0x296   :  { %v816_v4 = vmul.f32 0.0078125, %v812_v3 }
 0x297   :  { %v821_v5 = vpop.xlane.xlu1 %820 }
 0x298   :  { %v826_v6 = vmul.f32 %v816_v4, %v816_v4  ;;  %v824_v7 = vmul.f32 0.0078125, %v821_v5  ;;  %v836_v19 = vsub.f32 %v809_v62, %v816_v4 }
 0x299   :  { %v814_v8 = vpop.xlane.xlu0 %813 }
 0x29a   :  { %v828_v9 = vsub.f32 %v824_v7, %v826_v6  ;;  %v817_v10 = vmul.f32 0.0078125, %v814_v8 }
 0x29b   :  { %v823_v11 = vpop.xlane.xlu1 %822 }
 0x29c   :  { %v830_v12 = vmax.f32 %v828_v9, 0.0  ;;  %v827_v33 = vmul.f32 %v817_v10, %v817_v10  ;;  %v825_v13 = vmul.f32 0.0078125, %v823_v11  ;;  %v837_v26 = vsub.f32 %v810_v1, %v817_v10 }
 0x29e   :  { %v832_v14 = vadd.f32 1e-12, %v830_v12  ;;  %v829_v15 = vsub.f32 %v825_v13, %v827_v33 }
 0x2a0   :  { %1098 = vrsqrt.f32 %v832_v14  ;;  %v831_v18 = vmax.f32 %v829_v15, 0.0 }
 0x2a2   :  { %v833_v34 = vadd.f32 1e-12, %v831_v18 }
 0x2a4   :  { %1100 = vrsqrt.f32 %v833_v34 }
 0x2ad   :  { %v1099_v20 = vpop.eup %1098 }
 0x2ae   :  { %v838_v24 = vmul.f32 %v1099_v20, %v836_v19 }
 0x2b0   :  { %v847_v27 = vmul.f32 %v944_v21, %v838_v24 }
 0x2b1   :  { %v1101_v28 = vpop.eup %1100 }
 0x2b2   :  { %v839_v29 = vmul.f32 %v1101_v28, %v837_v26  ;;  %v856_v32 = vadd.f32 %v945_v25, %v847_v27 }
 0x2b4   :  { %v848_v35 = vmul.f32 %v944_v21, %v839_v29  ;;  %858 = vst [vmem:[#allocation10] sm:$0xff] %v856_v32 }
 0x2b6   :  { %v857_v36 = vadd.f32 %v945_v25, %v848_v35 }
 0x2b8   :  { %859 = vst [vmem:[#allocation10 + $0x8] sm:$0xff] %v857_v36 }
 0x2b9   :  { %1193 = shalt.err (!%p1190_p10)
}
 0x2ba   :  { %871 = dma.vmem_to_hbm [thread:$0]  %s866_s29, 256, %s1335_s7, [#allocation4], %s1214_s11, %s1214_s11, %s1215_s12  }
 0x2bb   :  { %1208 = dma.done.wait [#allocation4], 256  }
 0x2bc   :  { %1209 = vsyncadd [#allocation4], 4294967040 }
 0x2bd   :  { %875 = vsyncpa [#allocation3], 1 }
 0x2be   :  { %876 = vsyncpa [#allocation6], 1 }
 0x2bf   :  { %877 = vsyncpa [#allocation9], 1 }
 0x2c0   :  { %878 = vsyncpa [#allocation4], 1 }

</bundles_post_ra>
